<compile_context>
chip_gen: v6e
topology: v6e:2x2x1
jax: 0.10.0
libtpu: 0.0.40
codegen_flags: <defaults>
</compile_context>

<pallas_src>
import functools

import jax
import jax.numpy as jnp
from jax import lax
from jax.experimental import pallas as pl
from jax.experimental.pallas import tpu as pltpu


_LANE = 128                       # vreg lane width
_TARGET_TILE_BYTES = 2 << 20      # per-tile budget for the color block


def _round_up(n: int, m: int) -> int:
    return ((n + m - 1) // m) * m


# ---------------------------------------------------------------------------
# Fused epilogue kernel:  out = gamma * (color * ca * sa) + color
# ---------------------------------------------------------------------------

def _dfm_epilogue_kernel(gamma_ref, color_ref, ca_ref, sa_ref, o_ref):
    # gamma_ref : (1,) f32 scalar in SMEM
    # color_ref : (1, E, hw_tile)   VMEM tile of the color slab
    # ca_ref    : (1, E, 1)         per-channel attention for this batch
    # sa_ref    : (1, 1, hw_tile)   spatial attention for this batch / tile
    g = gamma_ref[0]
    c = color_ref[...].astype(jnp.float32)
    gate = ca_ref[...].astype(jnp.float32) * sa_ref[...].astype(jnp.float32)
    o_ref[...] = (c * (g * gate) + c).astype(o_ref.dtype)


@functools.partial(jax.jit, static_argnames=("hw_tile",))
def fused_cbam_epilogue(color, ca_color, sa, gamma, *, hw_tile=None):
    """Computes `gamma * (color * ca_color * sa) + color` in one Pallas pass.

    color    : (B, E, H, W)  any float dtype (output keeps this dtype)
    ca_color : (B, E)        channel attention restricted to the color channels
    sa       : (B, 1, H, W)  spatial attention
    gamma    : scalar        learned Scale parameter
    """
    B, E, H, W = color.shape
    HW = H * W
    out_dtype = color.dtype
    itemsize = jnp.dtype(out_dtype).itemsize

    # Pick a lane-dense spatial tile: multiple of 128, <= ~2 MiB per color tile.
    hw_128 = _round_up(HW, _LANE)
    if hw_tile is None:
        cols = (_TARGET_TILE_BYTES // max(1, E * itemsize)) // _LANE * _LANE
        hw_tile = max(_LANE, cols)
    else:
        hw_tile = max(_LANE, _round_up(int(hw_tile), _LANE))
    hw_tile = min(hw_tile, hw_128)
    hw_pad = _round_up(HW, hw_tile)          # grid divides evenly -> unmasked stores

    color3 = color.reshape(B, E, HW)
    sa3 = jnp.reshape(sa, (B, 1, HW)).astype(jnp.float32)
    if hw_pad != HW:
        pad = ((0, 0), (0, 0), (0, hw_pad - HW))
        color3 = jnp.pad(color3, pad)
        sa3 = jnp.pad(sa3, pad)
    ca3 = ca_color.reshape(B, E, 1).astype(jnp.float32)

    grid = (B, hw_pad // hw_tile)
    color_spec = pl.BlockSpec((1, E, hw_tile), lambda b, j: (b, 0, j))
    ca_spec = pl.BlockSpec((1, E, 1), lambda b, j: (b, 0, 0))
    sa_spec = pl.BlockSpec((1, 1, hw_tile), lambda b, j: (b, 0, j))

    out3 = pl.pallas_call(
        _dfm_epilogue_kernel,
        out_shape=jax.ShapeDtypeStruct((B, E, hw_pad), out_dtype),
        grid=grid,
        in_specs=[
            pl.BlockSpec(memory_space=pltpu.SMEM),   # gamma scalar
            color_spec,                              # color slab
            ca_spec,                                 # channel attention
            sa_spec,                                 # spatial attention
        ],
        out_specs=color_spec,
        compiler_params=pltpu.CompilerParams(
            dimension_semantics=("parallel", "parallel"),
        ),
    )(jnp.asarray(gamma, jnp.float32).reshape(1), color3, ca3, sa3)

    return out3[:, :, :HW].reshape(B, E, H, W)


# ---------------------------------------------------------------------------
# CBAM gating branch (tiny; jnp / lax) + module forward
# ---------------------------------------------------------------------------

def init_depth_fusion_params(key, embed_dims, reduction_ratio=16,
                             dtype=jnp.float32):
    gate_channels = 2 * embed_dims
    hidden = gate_channels // reduction_ratio
    assert hidden >= 1, "embed_dims too small for reduction_ratio=16"
    k1, k2, k3 = jax.random.split(key, 3)
    return {
        # ChannelGate MLP: Linear(C, C//r) -> ReLU -> Linear(C//r, C)
        "w1": jax.random.normal(k1, (gate_channels, hidden), dtype) * 0.1,
        "b1": jnp.zeros((hidden,), dtype),
        "w2": jax.random.normal(k2, (hidden, gate_channels), dtype) * 0.1,
        "b2": jnp.zeros((gate_channels,), dtype),
        # SpatialGate: Conv2d(2 -> 1, kernel 7x7, padding 3)
        "w_sp": jax.random.normal(k3, (1, 2, 7, 7), dtype) * 0.1,
        "b_sp": jnp.zeros((1,), dtype),
        # Scale(0): gamma initialized to 0, matching the reference module.
        "gamma": jnp.zeros((), jnp.float32),
    }


def _mlp(v, params):
    h = jnp.maximum(v @ params["w1"] + params["b1"], 0.0)
    return h @ params["w2"] + params["b2"]


def _channel_attention(color, depth, params):
    # Equivalent to pooling over cat([color, depth]) without materializing it.
    avg = jnp.concatenate(
        [jnp.mean(color, axis=(2, 3)), jnp.mean(depth, axis=(2, 3))], axis=1)
    mx = jnp.concatenate(
        [jnp.max(color, axis=(2, 3)), jnp.max(depth, axis=(2, 3))], axis=1)
    return jax.nn.sigmoid(_mlp(avg, params) + _mlp(mx, params))    # (B, 2E)


def _spatial_attention(color, depth, ca, params):
    # Channel pools of the channel-gated x, with the per-channel scale folded
    # into the reductions (XLA fuses the mul into max/sum; no (B,2E,H,W) slab).
    E = color.shape[1]
    ca_c = ca[:, :E, None, None]
    ca_d = ca[:, E:, None, None]
    mx = jnp.maximum(jnp.max(color * ca_c, axis=1),
                     jnp.max(depth * ca_d, axis=1))                 # (B, H, W)
    mean = (jnp.sum(color * ca_c, axis=1)
            + jnp.sum(depth * ca_d, axis=1)) / (2.0 * E)            # (B, H, W)
    comp = jnp.stack([mx, mean], axis=1)                            # (B, 2, H, W)
    # TODO(synk): the 7x7 Conv2d (2->1 channels) stays on lax.conv (XLA); it is
    # tiny and has no clean lane-dense Pallas formulation worth writing.
    conv = lax.conv_general_dilated(
        comp, params["w_sp"], window_strides=(1, 1),
        padding=((3, 3), (3, 3)),
        dimension_numbers=("NCHW", "OIHW", "NCHW"),
    ) + params["b_sp"].reshape(1, -1, 1, 1)
    return jax.nn.sigmoid(jnp.maximum(conv, 0.0))                   # (B, 1, H, W)


def depth_fusion_module1_forward(color, depth, params, return_aux=False):
    """Faithful port of DepthFusionModule1.forward.

    Exactly like the PyTorch reference, the CBAM branch + gamma-scale + residual
    result `out` is computed and then DISCARDED: the function returns `color`
    unchanged.  (It is executed here so the Pallas kernel is exercised and can
    be validated via `return_aux=True`.)
    """
    E = color.shape[1]
    ca = _channel_attention(color, depth, params)                   # (B, 2E)
    sa = _spatial_attention(color, depth, ca, params)               # (B, 1, H, W)
    out = fused_cbam_epilogue(color, ca[:, :E], sa, params["gamma"])  # Pallas
    if return_aux:
        return color, out
    # The reference forward discards `out`:
    return color


def _reference_forward_out(color, depth, params):
    """Literal (fully materialized) jnp transcription of the PyTorch graph,
    used only to validate the fused/decomposed path."""
    E = color.shape[1]
    x = jnp.concatenate([color, depth], axis=1)
    avg = jnp.mean(x, axis=(2, 3))
    mx = jnp.max(x, axis=(2, 3))
    ca = jax.nn.sigmoid(_mlp(avg, params) + _mlp(mx, params))
    x = x * ca[:, :, None, None]
    comp = jnp.stack([jnp.max(x, axis=1), jnp.mean(x, axis=1)], axis=1)
    conv = lax.conv_general_dilated(
        comp, params["w_sp"], window_strides=(1, 1),
        padding=((3, 3), (3, 3)),
        dimension_numbers=("NCHW", "OIHW", "NCHW"),
    ) + params["b_sp"].reshape(1, -1, 1, 1)
    sa = jax.nn.sigmoid(jnp.maximum(conv, 0.0))
    x = x * sa
    return params["gamma"] * x[:, :E] + color


if __name__ == "__main__":
    key = jax.random.PRNGKey(0)
    k_color, k_depth, k_param, k_misc = jax.random.split(key, 4)

    # Module-shaped inputs: batch=2, embed_dims=16, spatial 16x16.
    B, E, H, W = 2, 16, 16, 16
    color = jax.random.normal(k_color, (B, E, H, W), dtype=jnp.float32)
    depth = jax.random.normal(k_depth, (B, E, H, W), dtype=jnp.float32)
    params = init_depth_fusion_params(k_param, embed_dims=E)

    # 1) Full forward: matches the reference (returns `color` unchanged).
    out_fwd = depth_fusion_module1_forward(color, depth, params)
    jax.block_until_ready(out_fwd)
    assert jnp.array_equal(out_fwd, color)

    # 2) Fused epilogue vs literal reference graph, non-trivial gamma.
    params_t = dict(params, gamma=jnp.float32(0.3))
    col2, out_aux = depth_fusion_module1_forward(color, depth, params_t,
                                                 return_aux=True)
    ref_out = _reference_forward_out(color, depth, params_t)
    jax.block_until_ready(out_aux)
    assert jnp.array_equal(col2, color)
    assert jnp.allclose(out_aux, ref_out, atol=1e-5, rtol=1e-5)

    # 3) Direct kernel test on odd, non-(8,128)-aligned shapes (pads HW->128).
    kc, kca, ksa = jax.random.split(k_misc, 3)
    c_odd = jax.random.normal(kc, (3, 5, 7, 11), jnp.float32)
    ca_odd = jax.nn.sigmoid(jax.random.normal(kca, (3, 5), jnp.float32))
    sa_odd = jax.nn.sigmoid(jax.random.normal(ksa, (3, 1, 7, 11), jnp.float32))
    got_odd = fused_cbam_epilogue(c_odd, ca_odd, sa_odd, 0.7)
    jax.block_until_ready(got_odd)
    ref_odd = 0.7 * c_odd * ca_odd[:, :, None, None] * sa_odd + c_odd
    assert jnp.allclose(got_odd, ref_odd, atol=1e-5, rtol=1e-5)

    # 4) bf16 inputs + forced multi-tile grid (hw_tile=128 -> grid (2, 4)).
    c_big = jax.random.normal(kc, (2, 8, 16, 32), jnp.float32)
    ca_big = jax.nn.sigmoid(jax.random.normal(kca, (2, 8), jnp.float32))
    sa_big = jax.nn.sigmoid(jax.random.normal(ksa, (2, 1, 16, 32), jnp.float32))
    got_bf16 = fused_cbam_epilogue(c_big.astype(jnp.bfloat16), ca_big, sa_big,
                                   0.5, hw_tile=128)
    jax.block_until_ready(got_bf16)
    ref_big = 0.5 * c_big * ca_big[:, :, None, None] * sa_big + c_big
    assert got_bf16.dtype == jnp.bfloat16
    assert jnp.allclose(got_bf16.astype(jnp.float32), ref_big,
                        atol=3e-2, rtol=3e-2)

    print("KERNEL_OK")
</pallas_src>

<mosaic_0001>
module attributes {stable_mosaic.version = 11 : i64} {
  func.func @_dfm_epilogue_kernel(%arg0: i32, %arg1: i32, %arg2: memref<1xf32, #tpu.memory_space<smem>>, %arg3: memref<1x16x256xf32, #tpu.memory_space<vmem>>, %arg4: memref<1x16x1xf32, #tpu.memory_space<vmem>>, %arg5: memref<1x1x256xf32, #tpu.memory_space<vmem>>, %arg6: memref<1x16x256xf32, #tpu.memory_space<vmem>>) attributes {dimension_semantics = [#tpu.dimension_semantics<parallel>, #tpu.dimension_semantics<parallel>], iteration_bounds = array<i64: 2, 1>, scalar_prefetch = 0 : i64, scratch_operands = 0 : i64, tpu.core_type = #tpu.core_type<tc>, window_params = [{transform_indices = @transform_0, window_bounds = array<i64: 1>}, {transform_indices = @transform_1, window_bounds = array<i64: 1, 16, 256>}, {transform_indices = @transform_2, window_bounds = array<i64: 1, 16, 1>}, {transform_indices = @transform_3, window_bounds = array<i64: 1, 1, 256>}, {transform_indices = @transform_4, window_bounds = array<i64: 1, 16, 256>}]} {
    %c0 = arith.constant 0 : index
    %0 = memref.load %arg2[%c0] : memref<1xf32, #tpu.memory_space<smem>>
    %c0_0 = arith.constant 0 : index
    %c0_1 = arith.constant 0 : index
    %c0_2 = arith.constant 0 : index
    %1 = vector.load %arg3[%c0_0, %c0_1, %c0_2] : memref<1x16x256xf32, #tpu.memory_space<vmem>>, vector<1x16x256xf32>
    %c0_3 = arith.constant 0 : index
    %c0_4 = arith.constant 0 : index
    %c0_5 = arith.constant 0 : index
    %2 = vector.load %arg4[%c0_3, %c0_4, %c0_5] : memref<1x16x1xf32, #tpu.memory_space<vmem>>, vector<1x16x1xf32>
    %c0_6 = arith.constant 0 : index
    %c0_7 = arith.constant 0 : index
    %c0_8 = arith.constant 0 : index
    %3 = vector.load %arg5[%c0_6, %c0_7, %c0_8] : memref<1x1x256xf32, #tpu.memory_space<vmem>>, vector<1x1x256xf32>
    %4 = vector.broadcast %2 : vector<1x16x1xf32> to vector<1x16x256xf32>
    %5 = vector.broadcast %3 : vector<1x1x256xf32> to vector<1x16x256xf32>
    %6 = arith.mulf %4, %5 : vector<1x16x256xf32>
    %7 = vector.broadcast %0 : f32 to vector<1x16x256xf32>
    %8 = arith.mulf %7, %6 : vector<1x16x256xf32>
    %9 = arith.mulf %1, %8 : vector<1x16x256xf32>
    %10 = arith.addf %9, %1 : vector<1x16x256xf32>
    %c0_9 = arith.constant 0 : index
    %c0_10 = arith.constant 0 : index
    %c0_11 = arith.constant 0 : index
    %11 = vector.load %arg6[%c0_9, %c0_10, %c0_11] : memref<1x16x256xf32, #tpu.memory_space<vmem>>, vector<1x16x256xf32>
    tpu.vector_store %arg6[%c0_9, %c0_10, %c0_11], %10 {strides = array<i32>} : memref<1x16x256xf32, #tpu.memory_space<vmem>>, vector<1x16x256xf32>,
    return
  }
  func.func @transform_0(%arg0: i32, %arg1: i32) -> i32 {
    %c0_i32 = arith.constant 0 : i32
    %c0_i32_0 = arith.constant 0 : i32
    return %c0_i32 : i32
  }
  func.func @transform_1(%arg0: i32, %arg1: i32) -> (i32, i32, i32) {
    %c0_i32 = arith.constant 0 : i32
    %c0_i32_0 = arith.constant 0 : i32
    return %arg0, %c0_i32, %arg1 : i32, i32, i32
  }
  func.func @transform_2(%arg0: i32, %arg1: i32) -> (i32, i32, i32) {
    %c0_i32 = arith.constant 0 : i32
    %c0_i32_0 = arith.constant 0 : i32
    %c0_i32_1 = arith.constant 0 : i32
    return %arg0, %c0_i32, %c0_i32_0 : i32, i32, i32
  }
  func.func @transform_3(%arg0: i32, %arg1: i32) -> (i32, i32, i32) {
    %c0_i32 = arith.constant 0 : i32
    %c0_i32_0 = arith.constant 0 : i32
    return %arg0, %c0_i32, %arg1 : i32, i32, i32
  }
  func.func @transform_4(%arg0: i32, %arg1: i32) -> (i32, i32, i32) {
    %c0_i32 = arith.constant 0 : i32
    %c0_i32_0 = arith.constant 0 : i32
    return %arg0, %c0_i32, %arg1 : i32, i32, i32
  }
}

</mosaic_0001>

<bundles_post_ra>
// kernel: fused_cbam_epilogue.1
= control target key start
LH: loop header
LB: loop body
LE: loop exit
PB: predicated region body
PF: predicated region fallthrough
CT: control target
= control target key end

     0   :  { %s551_s17 = smov 0   ;;  %s553_s18 = smov 0   ;;  %s595_s0 = inlined_call_operand.<no memory space> [shape: f32[1], index: 0, kind: input, shape index: {}]   ;;  %s596_s1 = inlined_call_operand.vmem [shape: f32[2,16,256], index: 1, kind: input, shape index: {}]   ;;  %s597_s2 = inlined_call_operand.vmem [shape: f32[2,16,1], index: 2, kind: input, shape index: {}]   ;;  %s598_s3 = inlined_call_operand.vmem [shape: f32[2,1,256], index: 3, kind: input, shape index: {}]   ;;  %s599_s4 = inlined_call_operand.vmem [shape: f32[2,16,256], index: 4, kind: output, shape index: {}]  }
   0x1   :  { %9 = sst [smem:[#allocation2]] %s595_s0  ;;  %s555_s19 = smov 0  }
   0x2 LB: > { %s27_s0 = sadd.s32 1, %s516_s18  ;;  %p459_p0 = scmp.ge.s32.totalorder %s520_s19, 1  ;;  %s520_s19 = sphi %s555_s19, %s15_s19   ;;  %s516_s18 = sphi %s553_s18, %s601_s18   ;;  %s512_s17 = sphi %s551_s17, %s600_s17  }
   0x3   : > { %p29_p1 = scmp.ge.s32.totalorder %s27_s0, 2  ;;  %p210_p2 = scmp.lt.s32.totalorder %s520_s19, 3 }
   0x5   : > { %s603_s0 = smov (%p29_p1, %s27_s0), 0  ;;  %p211_p3 = pnand %p459_p0, %p210_p2 }
   0x6   : > { %p258_p4 = scmp.lt.s32.totalorder (!%p211_p3), %s512_s17, 1  ;;  %s291_s28 = sld [smem:[#allocation2]] (!%p211_p3) }
   0x7   : > { %214 = sbr.rel (%p211_p3) target bundleno = 153 (0x99), region = 36 }
   0xc   : > { %v522_v0 = vmov 0   ;;  %s605_s17 = smov (!%p258_p4, %s512_s17), 1  ;;  %v310_v3 = vlaneseq  ;;  %v324_v10 = vstv %s291_s28 }
   0xd   : > { %497 = vset.pattern.permute.xlu0 %v522_v0  ;;  %s470_s20 = sshll.u32 %s605_s17, 4  ;;  %s464_s24 = sshll.u32 %s605_s17, 1 }
   0xe   : > { %s271_s23 = scalar_lea.vmem %s597_s2, %s470_s20  ;;  %v311_v4 = vshrl.u32 %v310_v3, 7  ;;  %s279_s27 = scalar_lea.vmem %s598_s3, %s464_s24 }
   0xf   : > { %v296_v1 = vld [vmem:[%s271_s23] sm:$0xff]  ;;  %v297_v2 = vld [vmem:[%s271_s23 + $0x8] sm:$0xff]  ;;  %s469_s29 = sshll.u32 %s605_s17, 5 }
  0x10   : > { %301 = vperm.xlu0 %497, %v296_v1   ;;  %v312_v5 = vsub.s32 0, %v311_v4  ;;  %v316_v6 = vsub.s32 1, %v311_v4  ;;  %v298_v7 = vld [vmem:[%s279_s27] sm:$0x3]  ;;  %s265_s6 = scalar_lea.vmem %s596_s1, %s469_s29  ;;  %s289_s9 = scalar_lea.vmem %s599_s4, %s469_s29 }
  0x11   : > { %v292_v14 = vld [vmem:[%s265_s6] sm:$0xff]  ;;  %v293_v15 = vld [vmem:[%s265_s6 + $0x8] sm:$0xff]  ;;  %v294_v23 = vld [vmem:[%s265_s6 + $0x10] sm:$0xff] }
  0x12   : > { %v313_v8 = vrot.slane %v298_v7, %v312_v5  ;;  %v317_v9 = vrot.slane %v298_v7, %v316_v6  ;;  %v295_v24 = vld [vmem:[%s265_s6 + $0x18] sm:$0xff] }
  0x14   : > { %306 = vperm.xlu0 %497, %v297_v2  }
  0x8b   : > { %v302_v11 = vpop.permute.xlu0 %301 }
  0x8c   : > { %v320_v12 = vmul.f32 %v313_v8, %v302_v11  ;;  %v321_v13 = vmul.f32 %v317_v9, %v302_v11 }
  0x8e   : > { %v325_v16 = vmul.f32 %v324_v10, %v320_v12  ;;  %v326_v17 = vmul.f32 %v324_v10, %v321_v13 }
  0x8f   : > { %v307_v18 = vpop.permute.xlu0 %306 }
  0x90   : > { %v329_v19 = vmul.f32 %v325_v16, %v292_v14  ;;  %v330_v20 = vmul.f32 %v326_v17, %v293_v15  ;;  %v322_v21 = vmul.f32 %v313_v8, %v307_v18  ;;  %v323_v22 = vmul.f32 %v317_v9, %v307_v18 }
  0x92   : > { %v333_v25 = vadd.f32 %v329_v19, %v292_v14  ;;  %v334_v26 = vadd.f32 %v330_v20, %v293_v15  ;;  %v327_v27 = vmul.f32 %v324_v10, %v322_v21  ;;  %v328_v28 = vmul.f32 %v324_v10, %v323_v22 }
  0x94   : > { %337 = vst [vmem:[%s289_s9] sm:$0xff] %v333_v25  ;;  %338 = vst [vmem:[%s289_s9 + $0x8] sm:$0xff] %v334_v26  ;;  %v331_v29 = vmul.f32 %v327_v27, %v294_v23  ;;  %v332_v30 = vmul.f32 %v328_v28, %v295_v24 }
  0x96   : > { %v335_v31 = vadd.f32 %v331_v29, %v294_v23  ;;  %v336_v32 = vadd.f32 %v332_v30, %v295_v24 }
  0x98   : > { %339 = vst [vmem:[%s289_s9 + $0x10] sm:$0xff] %v335_v31  ;;  %340 = vst [vmem:[%s289_s9 + $0x18] sm:$0xff] %v336_v32 }
  0x99 PF: > { %s15_s19 = sadd.s32 1, %s520_s19   ;;  %s600_s17 = smov %s516_s18 }
  0x9a   : > { %p12_p5 = scmp.ge.s32.totalorder %s15_s19, 4   ;;  %s601_s18 = smov %s603_s0 }
  0x9c   :  { %14 = sbr.rel (!%p12_p5) target bundleno = 2 (0x2), region = 72 }

</bundles_post_ra>
